<compile_context>
chip_gen: v5e
topology: v5e:2x2
jax: 0.10.0
libtpu: 0.0.40
codegen_flags: <defaults>
</compile_context>

<pallas_src>
import functools

import jax
import jax.numpy as jnp
from jax.experimental import pallas as pl
from jax.experimental.pallas import tpu as pltpu


def _sepconv_im2col_kernel(x_ref, w_ref, mask_ref, o_ref, patches_ref, *,
                           K, W, dilation, padding):
    """Small-Cin path: sublane-aligned im2col + one MXU matmul.

    x_ref       : (Cin_pad, L)            input, channel-major, batch block flattened on lanes
    w_ref       : (Cout, K*K*Cin_pad)     fused weights, tap-major columns
    mask_ref    : (K*K*Cin_pad, L)        0/1 halo masks, pre-broadcast per channel row
    o_ref       : (Cout, L)               output (lane-dense store)
    patches_ref : (K*K*Cin_pad, L)        VMEM scratch: im2col patch matrix
    """
    x = x_ref[...]
    cin_pad, L = x.shape
    for kh in range(K):
        for kw in range(K):
            t = kh * K + kw
            dh = kh * dilation - padding
            dw = kw * dilation - padding
            shift = (-(dh * W + dw)) % L              # shifted[:, p] == x[:, p + dh*W + dw]
            shifted = pltpu.roll(x, shift=shift, axis=1) if shift else x
            m = mask_ref[pl.ds(t * cin_pad, cin_pad), :]
            # t*cin_pad is a static multiple of the sublane tile -> aligned, unmasked store.
            patches_ref[pl.ds(t * cin_pad, cin_pad), :] = (shifted * m).astype(patches_ref.dtype)
    y = jnp.dot(w_ref[...], patches_ref[...], preferred_element_type=jnp.float32)
    o_ref[...] = y.astype(o_ref.dtype)


def _sepconv_accum_kernel(x_ref, w_ref, mask_ref, o_ref, acc_ref, *,
                          K, W, dilation, padding):
    """Large-Cin path: per-tap matmuls accumulated in an f32 VMEM accumulator (no im2col scratch).

    x_ref    : (Cin_pad, L)
    w_ref    : (K*K, Cout, Cin_pad)   per-tap fused weights
    mask_ref : (K*K*Cin_pad, L)
    o_ref    : (Cout, L)
    acc_ref  : (Cout, L) f32 scratch
    """
    x = x_ref[...]
    cin_pad, L = x.shape
    for kh in range(K):
        for kw in range(K):
            t = kh * K + kw
            dh = kh * dilation - padding
            dw = kw * dilation - padding
            shift = (-(dh * W + dw)) % L
            shifted = pltpu.roll(x, shift=shift, axis=1) if shift else x
            m = mask_ref[pl.ds(t * cin_pad, cin_pad), :]
            contrib = jnp.dot(w_ref[t], (shifted * m).astype(w_ref.dtype),
                              preferred_element_type=jnp.float32)
            if t == 0:
                acc_ref[...] = contrib                # first tap: assign (no zero-init store)
            else:
                acc_ref[...] += contrib
    o_ref[...] = acc_ref[...].astype(o_ref.dtype)


def separable_conv2d(x_nchw, w_dw, w_pw, *, stride=1, padding=0, dilation=1,
                     mxu_dtype=None, block_lanes=2048):
    """Fused depthwise+pointwise conv.  x_nchw: (N,Cin,H,W); w_dw: (Cin,1,K,K); w_pw: (Cout,Cin,1,1)."""
    N, Cin, H, W = x_nchw.shape
    K = int(w_dw.shape[-1])
    Cout = int(w_pw.shape[0])
    assert w_dw.shape == (Cin, 1, K, K)
    assert w_pw.shape == (Cout, Cin, 1, 1)

    if stride != 1:
        # TODO(synk): strided depthwise conv not implemented (module default is stride=1).
        raise NotImplementedError("separable_conv2d: only stride=1 is supported")
    if 2 * padding != dilation * (K - 1):
        # TODO(synk): general (non size-preserving) padding not implemented.
        raise NotImplementedError(
            "separable_conv2d: requires 2*padding == dilation*(kernel_size-1)")

    out_dtype = x_nchw.dtype
    mxu_dtype = jnp.dtype(mxu_dtype) if mxu_dtype is not None else jnp.dtype(out_dtype)

    HW = H * W
    # Sublane-align the channel axis so every per-tap scratch write / dot operand is aligned.
    itemsize = jnp.dtype(out_dtype).itemsize
    sub = max(8, (4 // max(itemsize, 1)) * 8)          # 8 rows for f32, 16 for bf16
    cin_pad = ((Cin + sub - 1) // sub) * sub

    # Batch blocking: pack b_blk images side-by-side on the lane axis (lane-dense, wide matmul).
    target_lanes = max(HW, block_lanes)
    b_blk = 1
    for d in range(1, N + 1):
        if N % d == 0 and d * HW <= target_lanes:
            b_blk = d
    if (b_blk * HW) % 128 != 0:
        b_blk = N                                      # single full block is always a legal spec
    L = b_blk * HW
    num_blocks = N // b_blk

    # Fused effective weights, formed in float32 then cast ONCE to the MXU operand dtype.
    wdw = w_dw[:, 0, :, :].astype(jnp.float32)         # (Cin, K, K)
    wpw = w_pw[:, :, 0, 0].astype(jnp.float32)         # (Cout, Cin)
    w3 = (jnp.transpose(wdw, (1, 2, 0))[:, :, None, :] *
          wpw[None, None, :, :])                       # (K, K, Cout, Cin)
    w3 = w3.reshape(K * K, Cout, Cin)
    if cin_pad != Cin:
        w3 = jnp.pad(w3, ((0, 0), (0, 0), (0, cin_pad - Cin)))
    w3 = w3.astype(mxu_dtype)                          # (K*K, Cout, Cin_pad)

    # 0/1 halo masks per tap, tiled across the batch block and pre-broadcast per channel row
    # (avoids any in-kernel broadcast_in_dim; also makes the roll across concatenated images safe:
    #  any read that crosses an image boundary lands on a masked-out position).
    hh = jnp.arange(HW, dtype=jnp.int32) // W
    ww = jnp.arange(HW, dtype=jnp.int32) % W
    rows = []
    for kh in range(K):
        for kw in range(K):
            dh = kh * dilation - padding
            dw = kw * dilation - padding
            rows.append((hh + dh >= 0) & (hh + dh < H) & (ww + dw >= 0) & (ww + dw < W))
    masks = jnp.stack(rows, axis=0).astype(out_dtype)  # (K*K, HW)
    masks = jnp.tile(masks, (1, b_blk))                # (K*K, L)
    masks = jnp.repeat(masks, cin_pad, axis=0)         # (K*K*Cin_pad, L)

    # Channel-pad and go channel-major so b_blk images sit side by side on the lane axis.
    x_pad = x_nchw
    if cin_pad != Cin:
        x_pad = jnp.pad(x_pad, ((0, 0), (0, cin_pad - Cin), (0, 0), (0, 0)))
    x_cm = jnp.transpose(x_pad, (1, 0, 2, 3)).reshape(cin_pad, N * HW)

    # Advisory cost estimate for XLA's scheduler around the custom call.
    flops = 2 * N * HW * Cout * K * K * Cin
    bytes_accessed = (x_cm.size * x_cm.dtype.itemsize
                      + masks.size * masks.dtype.itemsize
                      + w3.size * w3.dtype.itemsize
                      + N * HW * Cout * itemsize)
    cost = pl.CostEstimate(flops=int(flops), transcendentals=0,
                           bytes_accessed=int(bytes_accessed))

    use_im2col = cin_pad < 32                          # tiny contraction -> single big matmul
    if use_im2col:
        # Tap-major 2D weights matching the patch-row ordering.
        w_arg = jnp.transpose(w3, (1, 0, 2)).reshape(Cout, K * K * cin_pad)
        kernel = functools.partial(_sepconv_im2col_kernel, K=K, W=W,
                                   dilation=dilation, padding=padding)
        w_spec = pl.BlockSpec((Cout, K * K * cin_pad), lambda b: (0, 0))
        scratch = [pltpu.VMEM((K * K * cin_pad, L), mxu_dtype)]
    else:
        w_arg = w3
        kernel = functools.partial(_sepconv_accum_kernel, K=K, W=W,
                                   dilation=dilation, padding=padding)
        w_spec = pl.BlockSpec((K * K, Cout, cin_pad), lambda b: (0, 0, 0))
        scratch = [pltpu.VMEM((Cout, L), jnp.float32)]

    out_cm = pl.pallas_call(
        kernel,
        out_shape=jax.ShapeDtypeStruct((Cout, N * HW), out_dtype),
        grid_spec=pltpu.PrefetchScalarGridSpec(
            num_scalar_prefetch=0,
            grid=(num_blocks,),
            in_specs=[
                pl.BlockSpec((cin_pad, L), lambda b: (0, b)),     # x (channel-major)
                w_spec,                                           # fused weights (resident)
                pl.BlockSpec((K * K * cin_pad, L), lambda b: (0, 0)),  # halo masks (resident)
            ],
            out_specs=pl.BlockSpec((Cout, L), lambda b: (0, b)),
            scratch_shapes=scratch,
        ),
        compiler_params=pltpu.CompilerParams(dimension_semantics=("parallel",)),
        cost_estimate=cost,
    )(x_cm, w_arg, masks)

    out = out_cm.reshape(Cout, N, H, W)
    return jnp.transpose(out, (1, 0, 2, 3))            # back to NCHW


def _reference(x_nchw, w_dw, w_pw, *, padding, dilation):
    """Pure-JAX reference: depthwise conv then pointwise conv (PyTorch semantics)."""
    dw = jax.lax.conv_general_dilated(
        x_nchw, w_dw,
        window_strides=(1, 1),
        padding=((padding, padding), (padding, padding)),
        rhs_dilation=(dilation, dilation),
        dimension_numbers=("NCHW", "OIHW", "NCHW"),
        feature_group_count=x_nchw.shape[1],
    )
    return jax.lax.conv_general_dilated(
        dw, w_pw,
        window_strides=(1, 1),
        padding=((0, 0), (0, 0)),
        dimension_numbers=("NCHW", "OIHW", "NCHW"),
    )


if __name__ == "__main__":
    def run_case(name, key, *, N, Cin, Cout, H, W, K, padding, dilation):
        kx, kd, kp = jax.random.split(key, 3)
        x = jax.random.normal(kx, (N, Cin, H, W), dtype=jnp.float32)
        w_depthwise = 0.1 * jax.random.normal(kd, (Cin, 1, K, K), dtype=jnp.float32)
        w_pointwise = 0.1 * jax.random.normal(kp, (Cout, Cin, 1, 1), dtype=jnp.float32)

        out = separable_conv2d(x, w_depthwise, w_pointwise,
                               padding=padding, dilation=dilation)
        out = jax.block_until_ready(out)

        ref = _reference(x, w_depthwise, w_pointwise, padding=padding, dilation=dilation)
        assert out.shape == ref.shape == (N, Cout, H, W), f"{name}: bad shape {out.shape}"
        assert jnp.allclose(out, ref, atol=1e-4, rtol=1e-4), f"{name}: mismatch vs reference"

    key = jax.random.PRNGKey(0)
    k1, k2, k3 = jax.random.split(key, 3)

    # K=3 / padding=1 instantiation (im2col path, Cin < 32).
    run_case("k3_small", k1, N=2, Cin=4, Cout=8, H=16, W=16, K=3, padding=1, dilation=1)
    # Module defaults: kernel_size=1, padding=0 (pure pointwise).
    run_case("k1_default", k2, N=2, Cin=4, Cout=8, H=16, W=16, K=1, padding=0, dilation=1)
    # Wider channels to exercise the per-tap-accumulate (no im2col scratch) path.
    run_case("k3_wide", k3, N=2, Cin=64, Cout=32, H=16, W=16, K=3, padding=1, dilation=1)

    print("KERNEL_OK")
</pallas_src>

<mosaic_0001>
module attributes {stable_mosaic.version = 11 : i64} {
  func.func @_sepconv_im2col_kernel(%arg0: i32, %arg1: memref<8x512xf32, #tpu.memory_space<vmem>>, %arg2: memref<8x72xf32, #tpu.memory_space<vmem>>, %arg3: memref<72x512xf32, #tpu.memory_space<vmem>>, %arg4: memref<8x512xf32, #tpu.memory_space<vmem>>, %arg5: memref<72x512xf32, #tpu.memory_space<vmem>>) attributes {dimension_semantics = [#tpu.dimension_semantics<parallel>], iteration_bounds = array<i64: 1>, scalar_prefetch = 0 : i64, scratch_operands = 1 : i64, tpu.core_type = #tpu.core_type<tc>, window_params = [{transform_indices = @transform_0, window_bounds = array<i64: 8, 512>}, {pipeline_mode = #tpu.pipeline_mode<synchronous>, transform_indices = @transform_1, window_bounds = array<i64: 8, 72>}, {pipeline_mode = #tpu.pipeline_mode<synchronous>, transform_indices = @transform_2, window_bounds = array<i64: 72, 512>}, {transform_indices = @transform_3, window_bounds = array<i64: 8, 512>}]} {
    %c0 = arith.constant 0 : index
    %c0_0 = arith.constant 0 : index
    %0 = vector.load %arg1[%c0, %c0_0] : memref<8x512xf32, #tpu.memory_space<vmem>>, vector<8x512xf32>
    %c17_i32 = arith.constant 17 : i32
    %1 = tpu.dynamic_rotate %0 by %c17_i32 dim 1 : vector<8x512xf32>, i32 -> vector<8x512xf32>
    %c0_1 = arith.constant 0 : index
    %c0_2 = arith.constant 0 : index
    %2 = vector.load %arg3[%c0_1, %c0_2] : memref<72x512xf32, #tpu.memory_space<vmem>>, vector<8x512xf32>
    %3 = arith.mulf %1, %2 : vector<8x512xf32>
    %c0_3 = arith.constant 0 : index
    %c0_4 = arith.constant 0 : index
    %4 = vector.load %arg5[%c0_3, %c0_4] : memref<72x512xf32, #tpu.memory_space<vmem>>, vector<8x512xf32>
    tpu.vector_store %arg5[%c0_3, %c0_4], %3 {strides = array<i32>} : memref<72x512xf32, #tpu.memory_space<vmem>>, vector<8x512xf32>,
    %c16_i32 = arith.constant 16 : i32
    %5 = tpu.dynamic_rotate %0 by %c16_i32 dim 1 : vector<8x512xf32>, i32 -> vector<8x512xf32>
    %c8 = arith.constant 8 : index
    %c0_5 = arith.constant 0 : index
    %6 = vector.load %arg3[%c8, %c0_5] : memref<72x512xf32, #tpu.memory_space<vmem>>, vector<8x512xf32>
    %7 = arith.mulf %5, %6 : vector<8x512xf32>
    %c8_6 = arith.constant 8 : index
    %c0_7 = arith.constant 0 : index
    %8 = vector.load %arg5[%c8_6, %c0_7] : memref<72x512xf32, #tpu.memory_space<vmem>>, vector<8x512xf32>
    tpu.vector_store %arg5[%c8_6, %c0_7], %7 {strides = array<i32>} : memref<72x512xf32, #tpu.memory_space<vmem>>, vector<8x512xf32>,
    %c15_i32 = arith.constant 15 : i32
    %9 = tpu.dynamic_rotate %0 by %c15_i32 dim 1 : vector<8x512xf32>, i32 -> vector<8x512xf32>
    %c16 = arith.constant 16 : index
    %c0_8 = arith.constant 0 : index
    %10 = vector.load %arg3[%c16, %c0_8] : memref<72x512xf32, #tpu.memory_space<vmem>>, vector<8x512xf32>
    %11 = arith.mulf %9, %10 : vector<8x512xf32>
    %c16_9 = arith.constant 16 : index
    %c0_10 = arith.constant 0 : index
    %12 = vector.load %arg5[%c16_9, %c0_10] : memref<72x512xf32, #tpu.memory_space<vmem>>, vector<8x512xf32>
    tpu.vector_store %arg5[%c16_9, %c0_10], %11 {strides = array<i32>} : memref<72x512xf32, #tpu.memory_space<vmem>>, vector<8x512xf32>,
    %c1_i32 = arith.constant 1 : i32
    %13 = tpu.dynamic_rotate %0 by %c1_i32 dim 1 : vector<8x512xf32>, i32 -> vector<8x512xf32>
    %c24 = arith.constant 24 : index
    %c0_11 = arith.constant 0 : index
    %14 = vector.load %arg3[%c24, %c0_11] : memref<72x512xf32, #tpu.memory_space<vmem>>, vector<8x512xf32>
    %15 = arith.mulf %13, %14 : vector<8x512xf32>
    %c24_12 = arith.constant 24 : index
    %c0_13 = arith.constant 0 : index
    %16 = vector.load %arg5[%c24_12, %c0_13] : memref<72x512xf32, #tpu.memory_space<vmem>>, vector<8x512xf32>
    tpu.vector_store %arg5[%c24_12, %c0_13], %15 {strides = array<i32>} : memref<72x512xf32, #tpu.memory_space<vmem>>, vector<8x512xf32>,
    %c32 = arith.constant 32 : index
    %c0_14 = arith.constant 0 : index
    %17 = vector.load %arg3[%c32, %c0_14] : memref<72x512xf32, #tpu.memory_space<vmem>>, vector<8x512xf32>
    %18 = arith.mulf %0, %17 : vector<8x512xf32>
    %c32_15 = arith.constant 32 : index
    %c0_16 = arith.constant 0 : index
    %19 = vector.load %arg5[%c32_15, %c0_16] : memref<72x512xf32, #tpu.memory_space<vmem>>, vector<8x512xf32>
    tpu.vector_store %arg5[%c32_15, %c0_16], %18 {strides = array<i32>} : memref<72x512xf32, #tpu.memory_space<vmem>>, vector<8x512xf32>,
    %c511_i32 = arith.constant 511 : i32
    %20 = tpu.dynamic_rotate %0 by %c511_i32 dim 1 : vector<8x512xf32>, i32 -> vector<8x512xf32>
    %c40 = arith.constant 40 : index
    %c0_17 = arith.constant 0 : index
    %21 = vector.load %arg3[%c40, %c0_17] : memref<72x512xf32, #tpu.memory_space<vmem>>, vector<8x512xf32>
    %22 = arith.mulf %20, %21 : vector<8x512xf32>
    %c40_18 = arith.constant 40 : index
    %c0_19 = arith.constant 0 : index
    %23 = vector.load %arg5[%c40_18, %c0_19] : memref<72x512xf32, #tpu.memory_space<vmem>>, vector<8x512xf32>
    tpu.vector_store %arg5[%c40_18, %c0_19], %22 {strides = array<i32>} : memref<72x512xf32, #tpu.memory_space<vmem>>, vector<8x512xf32>,
    %c497_i32 = arith.constant 497 : i32
    %24 = tpu.dynamic_rotate %0 by %c497_i32 dim 1 : vector<8x512xf32>, i32 -> vector<8x512xf32>
    %c48 = arith.constant 48 : index
    %c0_20 = arith.constant 0 : index
    %25 = vector.load %arg3[%c48, %c0_20] : memref<72x512xf32, #tpu.memory_space<vmem>>, vector<8x512xf32>
    %26 = arith.mulf %24, %25 : vector<8x512xf32>
    %c48_21 = arith.constant 48 : index
    %c0_22 = arith.constant 0 : index
    %27 = vector.load %arg5[%c48_21, %c0_22] : memref<72x512xf32, #tpu.memory_space<vmem>>, vector<8x512xf32>
    tpu.vector_store %arg5[%c48_21, %c0_22], %26 {strides = array<i32>} : memref<72x512xf32, #tpu.memory_space<vmem>>, vector<8x512xf32>,
    %c496_i32 = arith.constant 496 : i32
    %28 = tpu.dynamic_rotate %0 by %c496_i32 dim 1 : vector<8x512xf32>, i32 -> vector<8x512xf32>
    %c56 = arith.constant 56 : index
    %c0_23 = arith.constant 0 : index
    %29 = vector.load %arg3[%c56, %c0_23] : memref<72x512xf32, #tpu.memory_space<vmem>>, vector<8x512xf32>
    %30 = arith.mulf %28, %29 : vector<8x512xf32>
    %c56_24 = arith.constant 56 : index
    %c0_25 = arith.constant 0 : index
    %31 = vector.load %arg5[%c56_24, %c0_25] : memref<72x512xf32, #tpu.memory_space<vmem>>, vector<8x512xf32>
    tpu.vector_store %arg5[%c56_24, %c0_25], %30 {strides = array<i32>} : memref<72x512xf32, #tpu.memory_space<vmem>>, vector<8x512xf32>,
    %c495_i32 = arith.constant 495 : i32
    %32 = tpu.dynamic_rotate %0 by %c495_i32 dim 1 : vector<8x512xf32>, i32 -> vector<8x512xf32>
    %c64 = arith.constant 64 : index
    %c0_26 = arith.constant 0 : index
    %33 = vector.load %arg3[%c64, %c0_26] : memref<72x512xf32, #tpu.memory_space<vmem>>, vector<8x512xf32>
    %34 = arith.mulf %32, %33 : vector<8x512xf32>
    %c64_27 = arith.constant 64 : index
    %c0_28 = arith.constant 0 : index
    %35 = vector.load %arg5[%c64_27, %c0_28] : memref<72x512xf32, #tpu.memory_space<vmem>>, vector<8x512xf32>
    tpu.vector_store %arg5[%c64_27, %c0_28], %34 {strides = array<i32>} : memref<72x512xf32, #tpu.memory_space<vmem>>, vector<8x512xf32>,
    %c0_29 = arith.constant 0 : index
    %c0_30 = arith.constant 0 : index
    %36 = vector.load %arg2[%c0_29, %c0_30] : memref<8x72xf32, #tpu.memory_space<vmem>>, vector<8x72xf32>
    %c0_31 = arith.constant 0 : index
    %c0_32 = arith.constant 0 : index
    %37 = vector.load %arg5[%c0_31, %c0_32] : memref<72x512xf32, #tpu.memory_space<vmem>>, vector<72x512xf32>
    %cst = arith.constant dense<0.000000e+00> : vector<8x512xf32>
    %38 = tpu.matmul %36, %37, %cst {dimension_numbers = #tpu.dot_dimension_numbers<[1], [0], [0], [1], [0, 0, 1, 1], [], []>} : vector<8x72xf32>, vector<72x512xf32>, vector<8x512xf32> -> vector<8x512xf32>
    %c0_33 = arith.constant 0 : index
    %c0_34 = arith.constant 0 : index
    %39 = vector.load %arg4[%c0_33, %c0_34] : memref<8x512xf32, #tpu.memory_space<vmem>>, vector<8x512xf32>
    tpu.vector_store %arg4[%c0_33, %c0_34], %38 {strides = array<i32>} : memref<8x512xf32, #tpu.memory_space<vmem>>, vector<8x512xf32>,
    return
  }
  func.func @transform_0(%arg0: i32) -> (i32, i32) {
    %c0_i32 = arith.constant 0 : i32
    %c0_i32_0 = arith.constant 0 : i32
    return %c0_i32, %arg0 : i32, i32
  }
  func.func @transform_1(%arg0: i32) -> (i32, i32) {
    %c0_i32 = arith.constant 0 : i32
    %c0_i32_0 = arith.constant 0 : i32
    %c0_i32_1 = arith.constant 0 : i32
    return %c0_i32, %c0_i32_0 : i32, i32
  }
  func.func @transform_2(%arg0: i32) -> (i32, i32) {
    %c0_i32 = arith.constant 0 : i32
    %c0_i32_0 = arith.constant 0 : i32
    %c0_i32_1 = arith.constant 0 : i32
    return %c0_i32, %c0_i32_0 : i32, i32
  }
  func.func @transform_3(%arg0: i32) -> (i32, i32) {
    %c0_i32 = arith.constant 0 : i32
    %c0_i32_0 = arith.constant 0 : i32
    return %c0_i32, %arg0 : i32, i32
  }
}

</mosaic_0001>

<bundles_post_ra>
// kernel: tpu_custom_call.1
= control target key start
LH: loop header
LB: loop body
LE: loop exit
PB: predicated region body
PF: predicated region fallthrough
CT: control target
= control target key end

     0   :  { %8 = vsyncpa [#allocation4], 0  ;;  %s735_s0 = inlined_call_operand.hbm [shape: f32[8,512], index: 0, kind: input, shape index: {}]   ;;  %s736_s1 = inlined_call_operand.hbm [shape: f32[8,72], index: 1, kind: input, shape index: {}]   ;;  %s737_s2 = inlined_call_operand.hbm [shape: f32[72,512], index: 2, kind: input, shape index: {}]   ;;  %s738_s3 = inlined_call_operand.hbm [shape: f32[8,512], index: 3, kind: output, shape index: {}]  }
   0x1   :  { %9 = vsyncpa [#allocation7], 0  ;;  %s27_s14 = sshll.u32 %s736_s1, 4  ;;  %s28_s14 = int_to_ptr.hbm [resolvable:$true] %s27_s14 }
   0x2   :  { %10 = vsyncpa [#allocation5], 0  ;;  %s539_s15 = smov [#allocation6]   ;;  %s16_s19 = sshll.u32 %s735_s0, 4  ;;  %s17_s19 = int_to_ptr.hbm [resolvable:$true] %s16_s19 }
   0x3   :  { %s29_s16 = sshll.u32 %s539_s15, 4  ;;  %s540_s20 = smov [#allocation3]   ;;  %s30_s16 = int_to_ptr.vmem [resolvable:$true] %s29_s16 }
   0x4   :  { %32 = dma.hbm_to_vmem [thread:$0]  %s28_s14, 128, %s30_s16, [#allocation7]  }
   0x5   :  { %s18_s21 = sshll.u32 %s540_s20, 4  ;;  %s37_s24 = sshll.u32 %s737_s2, 4  ;;  %s19_s21 = int_to_ptr.vmem [resolvable:$true] %s18_s21  ;;  %s38_s24 = int_to_ptr.hbm [resolvable:$true] %s37_s24 }
   0x6   :  { %21 = dma.hbm_to_vmem [thread:$0]  %s17_s19, 512, %s19_s21, [#allocation4]  }
   0x7   :  { %s541_s1 = smov [#allocation8]   ;;  %s542_s26 = smov 512  }
   0x8   :  { %s39_s25 = sshll.u32 %s541_s1, 4  ;;  %s543_s27 = smov 32   ;;  %s40_s25 = int_to_ptr.vmem [resolvable:$true] %s39_s25 }
   0x9   :  { %45 = dma.hbm_to_vmem [thread:$0]  %s38_s24, 4608, %s40_s25, [#allocation7], %s542_s26, %s542_s26, %s543_s27  }
   0xa   :  { %533 = dma.done.wait [#allocation4], 512  }
   0xb   :  { %534 = vsyncadd [#allocation4], 4294966784 }
   0xc   :  { %535 = dma.done.wait [#allocation7], 4736  }
   0xd   :  { %536 = vsyncadd [#allocation7], 4294962560  ;;  %v582_v0 = vld [vmem:[#allocation3 + $0x18] sm:$0xff]  ;;  %v584_v1 = vld [vmem:[#allocation3 + $0x10] sm:$0xff]  ;;  %s544_s0 = smov 111   ;;  %s545_s2 = smov 112   ;;  %v70_v6 = vlaneseq }
   0xe   :  { %v586_v2 = vld [vmem:[#allocation3] sm:$0xff]  ;;  %257 = vrot.lane.b32.xlu1 %v582_v0, %s544_s0  ;;  %230 = vrot.lane.b32.xlu2 %v584_v1, %s545_s2  ;;  %s546_s28 = smov 113   ;;  %s547_s29 = smov 127   ;;  %v600_v3 = vld [vmem:[#allocation3 + $0x8] sm:$0xff]  ;;  %v266_v16 = vld [vmem:[#allocation8 + $0x110] sm:$0xff]  ;;  %vm313_vm8 = vcmask 588800  }
   0xf   :  { %251 = vrot.lane.b32.xlu0 %v586_v2, %s544_s0  ;;  %s548_s30 = smov 1   ;;  %s549_s4 = smov 15   ;;  %v624_v7 = vand.u32 127, %v70_v6  ;;  %v267_v10 = vld [vmem:[#allocation8 + $0x118] sm:$0xff]  ;;  %v241_v22 = vld [vmem:[#allocation8 + $0xf0] sm:$0xff]  ;;  %v264_v49 = vld [vmem:[#allocation8 + $0x100] sm:$0xff] }
  0x10   :  { %s550_s5 = smov 16   ;;  %s551_s6 = smov 17   ;;  %v242_v14 = vld [vmem:[#allocation8 + $0xf8] sm:$0xff]  ;;  %v216_v26 = vld [vmem:[#allocation8 + $0xd0] sm:$0xff]  ;;  %v265_v50 = vld [vmem:[#allocation8 + $0x108] sm:$0xff] }
  0x11   :  { %vm259_vm0 = vcmp.lt.s32.totalorder %v624_v7, 111  ;;  %vm234_vm1 = vcmp.lt.s32.totalorder %v624_v7, 112  ;;  %vm209_vm2 = vcmp.lt.s32.totalorder %v624_v7, 113  ;;  %v217_v28 = vld [vmem:[#allocation8 + $0xd8] sm:$0xff]  ;;  %vm184_vm3 = vcmp.lt.s32.totalorder %v624_v7, 127  ;;  %v191_v35 = vld [vmem:[#allocation8 + $0xb0] sm:$0xff] }
  0x12   :  { %v166_v36 = vld [vmem:[#allocation8 + $0x90] sm:$0xff]  ;;  %v192_v38 = vld [vmem:[#allocation8 + $0xb8] sm:$0xff]  ;;  %v239_v56 = vld [vmem:[#allocation8 + $0xe0] sm:$0xff]  ;;  %vm147_vm4 = vcmp.lt.s32.totalorder %v624_v7, 1  ;;  %vm122_vm5 = vcmp.lt.s32.totalorder %v624_v7, 15  ;;  %vm97_vm6 = vcmp.lt.s32.totalorder %v624_v7, 16 }
  0x13   :  { %v167_v39 = vld [vmem:[#allocation8 + $0x98] sm:$0xff]  ;;  %v170_v44 = vmul.f32 %v166_v36, %v584_v1  ;;  %v240_v57 = vld [vmem:[#allocation8 + $0xe8] sm:$0xff]  ;;  %v214_v62 = vld [vmem:[#allocation8 + $0xc0] sm:$0xff]  ;;  %vm72_vm7 = vcmp.lt.s32.totalorder %v624_v7, 17  ;;  %s552_s7 = smov [#allocation9]   ;;  %s408_s11 = sshll.u32 %s738_s3, 4  ;;  %s409_s11 = int_to_ptr.hbm [resolvable:$true] %s408_s11 }
  0x14   :  { %v171_v46 = vmul.f32 %v167_v39, %v582_v0  ;;  %v215_v63 = vld [vmem:[#allocation8 + $0xc8] sm:$0xff]  ;;  %s406_s8 = sshll.u32 %s552_s7, 4  ;;  %s407_s8 = int_to_ptr.vmem [resolvable:$true] %s406_s8 }
  0x16   :  { %232 = vrot.lane.b32.xlu2 %v582_v0, %s545_s2  ;;  %226 = vrot.lane.b32.xlu1 %v586_v2, %s545_s2 }
  0x17   :  { %255 = vrot.lane.b32.xlu0 %v584_v1, %s544_s0 }
  0x1e   :  { %207 = vrot.lane.b32.xlu2 %v582_v0, %s546_s28  ;;  %205 = vrot.lane.b32.xlu1 %v584_v1, %s546_s28 }
  0x1f   :  { %201 = vrot.lane.b32.xlu0 %v586_v2, %s546_s28 }
  0x26   :  { %182 = vrot.lane.b32.xlu2 %v582_v0, %s547_s29  ;;  %180 = vrot.lane.b32.xlu1 %v584_v1, %s547_s29 }
  0x27   :  { %176 = vrot.lane.b32.xlu0 %v586_v2, %s547_s29 }
  0x2e   :  { %141 = vrot.lane.b32.xlu2 %v600_v3, %s548_s30  ;;  %228 = vrot.lane.b32.xlu1 %v600_v3, %s545_s2 }
  0x2f   :  { %253 = vrot.lane.b32.xlu0 %v600_v3, %s544_s0 }
  0x36   :  { %203 = vrot.lane.b32.xlu2 %v600_v3, %s546_s28  ;;  %145 = vrot.lane.b32.xlu1 %v582_v0, %s548_s30 }
  0x37   :  { %143 = vrot.lane.b32.xlu0 %v584_v1, %s548_s30 }
  0x3e   :  { %120 = vrot.lane.b32.xlu2 %v582_v0, %s549_s4  ;;  %118 = vrot.lane.b32.xlu1 %v584_v1, %s549_s4 }
  0x3f   :  { %116 = vrot.lane.b32.xlu0 %v600_v3, %s549_s4 }
  0x46   :  { %93 = vrot.lane.b32.xlu2 %v584_v1, %s550_s5  ;;  %91 = vrot.lane.b32.xlu1 %v600_v3, %s550_s5 }
  0x47   :  { %178 = vrot.lane.b32.xlu0 %v600_v3, %s547_s29 }
  0x4e   :  { %66 = vrot.lane.b32.xlu2 %v584_v1, %s551_s6  ;;  %64 = vrot.lane.b32.xlu1 %v600_v3, %s551_s6 }
  0x4f   :  { %95 = vrot.lane.b32.xlu0 %v582_v0, %s550_s5 }
  0x56   :  { %114 = vrot.lane.b32.xlu2 %v586_v2, %s549_s4  ;;  %139 = vrot.lane.b32.xlu1 %v586_v2, %s548_s30 }
  0x57   :  { %68 = vrot.lane.b32.xlu0 %v582_v0, %s551_s6 }
  0x5e   :  { %62 = vrot.lane.b32.xlu1 %v586_v2, %s551_s6 }
  0x5f   :  { %89 = vrot.lane.b32.xlu0 %v586_v2, %s550_s5 }
  0x68   :  { %v622_v4 = vpop.permute.xlu2 %230 }
  0x70   :  { %v233_v5 = vpop.permute.xlu2 %232 }
  0x71   :  { %v235_v19 = vsel %vm234_vm1, %v622_v4, %v233_v5 }
  0x72   :  { %v245_v25 = vmul.f32 %v241_v22, %v235_v19 }
  0x78   :  { %v208_v8 = vpop.permute.xlu2 %207 }
  0x80   :  { %v258_v9 = vpop.permute.xlu1 %257  ;;  %v183_v20 = vpop.permute.xlu2 %182 }
  0x81   :  { %v252_v11 = vpop.permute.xlu0 %251 }
  0x82   :  { %v263_v12 = vsel %vm259_vm0, %v258_v9, %v252_v11 }
  0x83   :  { %v271_v13 = vmul.f32 %v267_v10, %v263_v12  ;;  %v155_v10 = vld [vmem:[#allocation8 + $0x78] sm:$0xff] }
  0x85   :  { %384 = vmatpush.msra.mxu3 %v271_v13 }
  0x88   :  { %v227_v15 = vpop.permute.xlu1 %226  ;;  %v642_v34 = vpop.permute.xlu2 %141 }
  0x89   :  { %v238_v17 = vsel %vm234_vm1, %v233_v5, %v227_v15  ;;  %v256_v18 = vpop.permute.xlu0 %255 }
  0x8a   :  { %v260_v21 = vsel %vm259_vm0, %v256_v18, %v258_v9  ;;  %v246_v23 = vmul.f32 %v242_v14, %v238_v17  ;;  %v154_v9 = vld [vmem:[#allocation8 + $0x70] sm:$0xff] }
  0x8b   :  { %v270_v24 = vmul.f32 %v266_v16, %v260_v21  ;;  %v130_v16 = vld [vmem:[#allocation8 + $0x58] sm:$0xff] }
  0x8c   :  { %385 = vmatpush.msra.mxu3 %v246_v23 }
  0x8d   :  { %364 = vmatpush.msra.mxu2 %v270_v24 }
  0x8f   :  { %365 = vmatpush.msra.mxu2 %v245_v25  ;;  %v189_v25 = vld [vmem:[#allocation8 + $0xa0] sm:$0xff] }
  0x90   :  { %v206_v27 = vpop.permute.xlu1 %205  ;;  %v204_v47 = vpop.permute.xlu2 %203 }
  0x91   :  { %v210_v29 = vsel %vm209_vm2, %v206_v27, %v208_v8  ;;  %v202_v30 = vpop.permute.xlu0 %201  ;;  %v211_v60 = vsel %vm209_vm2, %v204_v47, %v206_v27 }
  0x92   :  { %v213_v31 = vsel %vm209_vm2, %v208_v8, %v202_v30  ;;  %v220_v32 = vmul.f32 %v216_v26, %v210_v29  ;;  %v212_v61 = vsel %vm209_vm2, %v202_v30, %v204_v47  ;;  %v219_v5 = vmul.f32 %v215_v63, %v211_v60  ;;  %v104_v26 = vld [vmem:[#allocation8 + $0x30] sm:$0xff]  ;;  %v164_v29 = vld [vmem:[#allocation8 + $0x80] sm:$0xff]  ;;  %v165_v30 = vld [vmem:[#allocation8 + $0x88] sm:$0xff] }
  0x93   :  { %v221_v33 = vmul.f32 %v217_v28, %v213_v31  ;;  %v190_v28 = vld [vmem:[#allocation8 + $0xa8] sm:$0xff] }
  0x94   :  { %366 = vmatpush.msra.mxu2 %v220_v32  ;;  %v128_v60 = vld [vmem:[#allocation8 + $0x48] sm:$0xff] }
  0x95   :  { %386 = vmatpush.msra.mxu3 %v221_v33 }
  0x98   :  { %v645_v37 = vpop.permute.xlu1 %180  ;;  %v671_v6 = vpop.permute.xlu2 %120 }
  0x99   :  { %v185_v40 = vsel %vm184_vm3, %v645_v37, %v183_v20  ;;  %v650_v41 = vpop.permute.xlu0 %176 }
  0x9a   :  { %v188_v42 = vsel %vm184_vm3, %v183_v20, %v650_v41  ;;  %v195_v43 = vmul.f32 %v191_v35, %v185_v40  ;;  %v168_v40 = vmul.f32 %v164_v29, %v586_v2 }
  0x9b   :  { %v196_v45 = vmul.f32 %v192_v38, %v188_v42  ;;  %v169_v42 = vmul.f32 %v165_v30, %v600_v3  ;;  %v276_v3 = vld [vmem:[#allocation6] sm:$0xff] }
  0x9c   :  { %367 = vmatpush.msra.mxu2 %v195_v43 }
  0x9d   :  { %387 = vmatpush.msra.mxu3 %v196_v45  ;;  %v105_v45 = vld [vmem:[#allocation8 + $0x38] sm:$0xff] }
  0x9e   :  { %368 = vmatpush.msra.mxu2 %v170_v44  ;;  %v79_v44 = vld [vmem:[#allocation8 + $0x10] sm:$0xff] }
  0x9f   :  { %388 = vmatpush.msra.mxu3 %v171_v46 }
  0xa0   :  { %v229_v48 = vpop.permute.xlu1 %228  ;;  %v94_v21 = vpop.permute.xlu2 %93 }
  0xa1   :  { %v254_v51 = vpop.permute.xlu0 %253  ;;  %v236_v52 = vsel %vm234_vm1, %v229_v48, %v622_v4  ;;  %v237_v53 = vsel %vm234_vm1, %v227_v15, %v229_v48  ;;  %v218_v4 = vmul.f32 %v214_v62, %v212_v61 }
  0xa2   :  { %v262_v54 = vsel %vm259_vm0, %v252_v11, %v254_v51  ;;  %v261_v55 = vsel %vm259_vm0, %v254_v51, %v256_v18  ;;  %v243_v0 = vmul.f32 %v239_v56, %v237_v53  ;;  %v244_v1 = vmul.f32 %v240_v57, %v236_v52  ;;  %v129_v18 = vld [vmem:[#allocation8 + $0x50] sm:$0xff]  ;;  %v153_v51 = vld [vmem:[#allocation8 + $0x68] sm:$0xff]  ;;  %v80_v53 = vld [vmem:[#allocation8 + $0x18] sm:$0xff] }
  0xa3   :  { %v268_v58 = vmul.f32 %v264_v49, %v262_v54  ;;  %v269_v59 = vmul.f32 %v265_v50, %v261_v55  ;;  %v152_v50 = vld [vmem:[#allocation8 + $0x60] sm:$0xff] }
  0xa5   :  { %324 = vmatpush.msra.mxu0 %v268_v58  ;;  %344 = vmatpush.msra.mxu1 %v269_v59  ;;  %v127_v59 = vld [vmem:[#allocation8 + $0x40] sm:$0xff] }
  0xa7   :  { %325 = vmatpush.msra.mxu0 %v243_v0  ;;  %345 = vmatpush.msra.mxu1 %v244_v1 }
  0xa8   :  { %v673_v8 = vpop.permute.xlu1 %145  ;;  %v67_v43 = vpop.permute.xlu2 %66 }
  0xa9   :  { %326 = vmatpush.msra.mxu0 %v218_v4  ;;  %346 = vmatpush.msra.mxu1 %v219_v5  ;;  %v144_v11 = vpop.permute.xlu0 %143  ;;  %v102_v5 = vld [vmem:[#allocation8 + $0x20] sm:$0xff] }
  0xaa   :  { %v148_v12 = vsel %vm147_vm4, %v144_v11, %v673_v8  ;;  %v149_v13 = vsel %vm147_vm4, %v642_v34, %v144_v11 }
  0xab   :  { %v158_v14 = vmul.f32 %v154_v9, %v149_v13  ;;  %v159_v15 = vmul.f32 %v155_v10, %v148_v12  ;;  %v77_v13 = vld [vmem:[#allocation8] sm:$0xff] }
  0xad   :  { %369 = vmatpush.msra.mxu2 %v158_v14  ;;  %389 = vmatpush.msra.mxu3 %v159_v15  ;;  %v78_v14 = vld [vmem:[#allocation8 + $0x8] sm:$0xff] }
  0xb0   :  { %v119_v17 = vpop.permute.xlu1 %118  ;;  %v115_v49 = vpop.permute.xlu2 %114 }
  0xb1   :  { %v123_v19 = vsel %vm122_vm5, %v119_v17, %v671_v6  ;;  %v117_v20 = vpop.permute.xlu0 %116  ;;  %v126_v54 = vsel %vm122_vm5, %v671_v6, %v115_v49  ;;  %v103_v6 = vld [vmem:[#allocation8 + $0x28] sm:$0xff] }
  0xb2   :  { %v124_v22 = vsel %vm122_vm5, %v117_v20, %v119_v17  ;;  %v134_v23 = vmul.f32 %v130_v16, %v123_v19  ;;  %v125_v55 = vsel %vm122_vm5, %v115_v49, %v117_v20  ;;  %v131_v1 = vmul.f32 %v127_v59, %v126_v54 }
  0xb3   :  { %v133_v24 = vmul.f32 %v129_v18, %v124_v22  ;;  %v132_v4 = vmul.f32 %v128_v60, %v125_v55 }
  0xb4   :  { %390 = vmatpush.msra.mxu3 %v134_v23 }
  0xb5   :  { %370 = vmatpush.msra.mxu2 %v133_v24 }
  0xb8   :  { %v688_v27 = vpop.permute.xlu1 %91 }
  0xb9   :  { %v99_v31 = vsel %vm97_vm6, %v688_v27, %v94_v21  ;;  %v179_v32 = vpop.permute.xlu0 %178 }
  0xba   :  { %v186_v33 = vsel %vm184_vm3, %v179_v32, %v645_v37  ;;  %v187_v35 = vsel %vm184_vm3, %v650_v41, %v179_v32  ;;  %v108_v36 = vmul.f32 %v104_v26, %v99_v31 }
  0xbb   :  { %v193_v38 = vmul.f32 %v189_v25, %v187_v35  ;;  %v194_v39 = vmul.f32 %v190_v28, %v186_v33 }
  0xbc   :  { %371 = vmatpush.msra.mxu2 %v108_v36 }
  0xbd   :  { %327 = vmatpush.msra.mxu0 %v193_v38  ;;  %347 = vmatpush.msra.mxu1 %v194_v39 }
  0xbf   :  { %328 = vmatpush.msra.mxu0 %v168_v40  ;;  %348 = vmatpush.msra.mxu1 %v169_v42 }
  0xc0   :  { %v65_v37 = vpop.permute.xlu1 %64 }
  0xc1   :  { %v74_v41 = vsel %vm72_vm7, %v65_v37, %v67_v43  ;;  %v96_v46 = vpop.permute.xlu0 %95 }
  0xc2   :  { %v98_v2 = vsel %vm97_vm6, %v94_v21, %v96_v46  ;;  %v83_v47 = vmul.f32 %v79_v44, %v74_v41 }
  0xc3   :  { %v109_v48 = vmul.f32 %v105_v45, %v98_v2 }
  0xc4   :  { %372 = vmatpush.msra.mxu2 %v83_v47 }
  0xc5   :  { %391 = vmatpush.msra.mxu3 %v109_v48  ;;  %421 = vmatmul.msk.f32.vlgmr.msra.gmra.mxu2 %vm313_vm8, %v276_v3 }
  0xc8   :  { %v140_v52 = vpop.permute.xlu1 %139 }
  0xc9   :  { %v150_v56 = vsel %vm147_vm4, %v140_v52, %v642_v34  ;;  %v151_v57 = vsel %vm147_vm4, %v673_v8, %v140_v52  ;;  %v69_v58 = vpop.permute.xlu0 %68 }
  0xca   :  { %v73_v61 = vsel %vm72_vm7, %v67_v43, %v69_v58  ;;  %v156_v62 = vmul.f32 %v152_v50, %v151_v57  ;;  %v157_v63 = vmul.f32 %v153_v51, %v150_v56 }
  0xcb   :  { %v84_v0 = vmul.f32 %v80_v53, %v73_v61 }
  0xcc   :  { %329 = vmatpush.msra.mxu0 %v156_v62  ;;  %349 = vmatpush.msra.mxu1 %v157_v63 }
  0xcd   :  { %392 = vmatpush.msra.mxu3 %v84_v0 }
  0xce   :  { %330 = vmatpush.msra.mxu0 %v131_v1  ;;  %350 = vmatpush.msra.mxu1 %v132_v4 }
  0xcf   :  { %422 = vmatmul.msk.f32.vlgmr.msra.gmra.mxu3 %vm313_vm8, %v276_v3 }
  0xd0   :  { %v63_v34 = vpop.permute.xlu1 %62 }
  0xd1   :  { %v90_v8 = vpop.permute.xlu0 %89  ;;  %v75_v9 = vsel %vm72_vm7, %v63_v34, %v65_v37  ;;  %v76_v10 = vsel %vm72_vm7, %v69_v58, %v63_v34 }
  0xd2   :  { %v100_v11 = vsel %vm97_vm6, %v90_v8, %v688_v27  ;;  %v101_v12 = vsel %vm97_vm6, %v96_v46, %v90_v8  ;;  %v81_v17 = vmul.f32 %v77_v13, %v76_v10  ;;  %v82_v18 = vmul.f32 %v78_v14, %v75_v9 }
  0xd3   :  { %v106_v15 = vmul.f32 %v102_v5, %v101_v12  ;;  %v107_v16 = vmul.f32 %v103_v6, %v100_v11 }
  0xd5   :  { %331 = vmatpush.msra.mxu0 %v106_v15  ;;  %351 = vmatpush.msra.mxu1 %v107_v16 }
  0xd7   :  { %332 = vmatpush.msra.mxu0 %v81_v17  ;;  %352 = vmatpush.msra.mxu1 %v82_v18 }
  0xd8   :  { %419 = vmatmul.msk.f32.vlgmr.msra.gmra.mxu0 %vm313_vm8, %v276_v3  ;;  %420 = vmatmul.msk.f32.vlgmr.msra.gmra.mxu1 %vm313_vm8, %v276_v3 }
 0x148   :  { %v374_v19 = vpop.f32.mrf.mxu2 }
 0x149   :  { %399 = vst [vmem:[#allocation9 + $0x10] sm:$0xff] %v374_v19 }
 0x152   :  { %v394_v20 = vpop.f32.mrf.mxu3 }
 0x153   :  { %400 = vst [vmem:[#allocation9 + $0x18] sm:$0xff] %v394_v20 }
 0x155   :  { %v334_v7 = vpop.f32.mrf.mxu0  ;;  %v354_v21 = vpop.f32.mrf.mxu1 }
 0x156   :  { %397 = vst [vmem:[#allocation9] sm:$0xff] %v334_v7 }
 0x157   :  { %398 = vst [vmem:[#allocation9 + $0x8] sm:$0xff] %v354_v21 }
 0x158   :  { %411 = dma.vmem_to_hbm [thread:$0]  %s407_s8, 512, %s409_s11, [#allocation5]  }
 0x159   :  { %537 = dma.done.wait [#allocation5], 512  }
 0x15a   :  { %538 = vsyncadd [#allocation5], 4294966784 }
 0x15b   :  { %416 = vsyncpa [#allocation4], 1 }
 0x15c   :  { %417 = vsyncpa [#allocation7], 1 }
 0x15d   :  { %418 = vsyncpa [#allocation5], 1 }

</bundles_post_ra>
